<compile_context>
chip_gen: v6e
topology: v6e:2x2x1
jax: 0.10.0
libtpu: 0.0.40
codegen_flags: <defaults>
</compile_context>

<pallas_src>
import math

import jax
import jax.numpy as jnp
from jax.experimental import pallas as pl
from jax.experimental.pallas import tpu as pltpu

_SQRT_2PI = math.sqrt(2.0 * math.pi)
_INV_SQRT_2PI = 1.0 / _SQRT_2PI
_RELU_SCALE = math.sqrt(8.0 / math.pi)           # NPNRelu scale
_XI_SQ = math.pi / 8.0                           # NPNSigmoid xi^2
_ALPHA = 4.0 - 2.0 * math.sqrt(2.0)
_BETA = -math.log(math.sqrt(2.0) + 1.0)
_VAR_EPS = 1e-12


# ---------------------------------------------------------------------------
# Nonlinearities (pure jnp; shared by the Pallas kernel and the JAX reference)
# ---------------------------------------------------------------------------
def _npn_relu(o_m, o_s):
    o_s = jnp.maximum(o_s, _VAR_EPS)             # guard rsqrt/exp
    inv_sqrt_s = jax.lax.rsqrt(o_s)
    sqrt_s = o_s * inv_sqrt_s                    # = sqrt(o_s), reuses rsqrt
    z = o_m * inv_sqrt_s
    gate = jax.nn.sigmoid(_RELU_SCALE * z)
    gauss = jnp.exp(-0.5 * z * z) * _INV_SQRT_2PI
    a_m = gate * o_m + sqrt_s * gauss
    a_s = gate * (o_m * o_m + o_s) + o_m * sqrt_s * gauss - a_m * a_m
    return a_m, jnp.maximum(a_s, 0.0)


def _npn_sigmoid(o_m, o_s):
    o_s = jnp.maximum(o_s, 0.0)
    a_m = jax.nn.sigmoid(o_m * jax.lax.rsqrt(1.0 + _XI_SQ * o_s))
    a_s = jax.nn.sigmoid(
        _ALPHA * (o_m + _BETA)
        * jax.lax.rsqrt(1.0 + _XI_SQ * _ALPHA * _ALPHA * o_s)) - a_m * a_m
    return a_m, jnp.maximum(a_s, 0.0)


# ---------------------------------------------------------------------------
# Pallas kernel: whole NPN MLP (3 fused NPNLinear + 2 NPNRelu + NPNSigmoid)
# No grid; every operand is a single whole-array VMEM block.
# ---------------------------------------------------------------------------
def _npn_kernel(x_ref, w_ref, b_ref, out_ref):
    f = out_ref.shape[1]

    def fused_linear(x_m, x_s, layer):
        # One MXU dot per layer: LHS (1, 4f), RHS (4f, 2f) -> [o_m | o_s]
        lhs = jnp.concatenate([x_m, x_s, x_s, x_m * x_m], axis=1)
        o = jnp.dot(lhs, w_ref[layer], preferred_element_type=jnp.float32)
        o = o + b_ref[layer:layer + 1, :]
        return o[:, :f], o[:, f:]

    x = x_ref[...]                                   # (1, f)
    # layer 1: dual_input=False -> x_m = x, x_s = x * x
    o_m, o_s = fused_linear(x, x * x, 0)
    a_m, a_s = _npn_relu(o_m, o_s)
    # layer 2
    o_m, o_s = fused_linear(a_m, a_s, 1)
    a_m, a_s = _npn_relu(o_m, o_s)
    # layer 3 + sigmoid head
    o_m, o_s = fused_linear(a_m, a_s, 2)
    a_m, a_s = _npn_sigmoid(o_m, o_s)
    out_ref[...] = jnp.concatenate([a_m, a_s], axis=0)   # row 0 = mean, row 1 = var


# ---------------------------------------------------------------------------
# One-time parameter packing (outside the kernel): softplus + w_m^2 + block
# layout so each NPNLinear becomes a single matmul with K = 4*feats.
# ---------------------------------------------------------------------------
def pack_npn_params(params):
    def pack_layer(w_m, w_s_, b_m, b_s_):
        w_m = w_m.astype(jnp.float32)
        w_s = jax.nn.softplus(w_s_.astype(jnp.float32))
        b_s = jax.nn.softplus(b_s_.astype(jnp.float32))
        z = jnp.zeros_like(w_m)
        # row blocks = [x_m | x_s | x_s | x_m^2], col blocks = [o_m | o_s]
        w_f = jnp.concatenate([
            jnp.concatenate([w_m, z], axis=1),
            jnp.concatenate([z, w_s], axis=1),
            jnp.concatenate([z, w_m * w_m], axis=1),
            jnp.concatenate([z, w_s], axis=1),
        ], axis=0)                                                 # (4*fin, 2*fout)
        b_f = jnp.concatenate([b_m.astype(jnp.float32), b_s], axis=1)  # (1, 2*fout)
        return w_f, b_f

    packed = [pack_layer(params[f"w{l}_m"], params[f"w{l}_s_"],
                         params[f"b{l}_m"], params[f"b{l}_s_"]) for l in (1, 2, 3)]
    w_packed = jnp.stack([w for w, _ in packed], axis=0)           # (3, 4f, 2f)
    b_packed = jnp.concatenate([b for _, b in packed], axis=0)     # (3, 2f)
    return w_packed, b_packed


def npn_forward(g, w_packed, b_packed):
    feats = w_packed.shape[2] // 2
    n = w_packed.shape[1] // 4
    x = g.reshape(1, n).astype(jnp.float32)          # g.reshape(1, -1)

    vmem_spec = pl.BlockSpec(memory_space=pltpu.MemorySpace.VMEM)
    out = pl.pallas_call(
        _npn_kernel,
        in_specs=[vmem_spec, vmem_spec, vmem_spec],
        out_specs=vmem_spec,
        out_shape=jax.ShapeDtypeStruct((2, feats), jnp.float32),
    )(x, w_packed.astype(jnp.float32), b_packed.astype(jnp.float32))
    # x.view(-1), s.view(-1)
    return out[0], out[1]


# ---------------------------------------------------------------------------
# Deterministic parameter init (shapes from NPNLinear(in, out))
# ---------------------------------------------------------------------------
def _init_linear(key, fin, fout):
    k1, k2, k3 = jax.random.split(key, 3)
    bound = math.sqrt(6.0 / (fin + fout))
    w_m = jax.random.uniform(k1, (fin, fout), jnp.float32, -bound, bound)
    w_s_init = jax.random.uniform(k2, (fin, fout), jnp.float32, 0.01 * bound, bound)
    w_s_ = jnp.log(jnp.expm1(w_s_init))               # inverse softplus
    b_m = jnp.zeros((1, fout), jnp.float32)
    b_s_init = jax.random.uniform(k3, (1, fout), jnp.float32, 0.005, 0.01)
    b_s_ = jnp.log(jnp.expm1(b_s_init))
    return w_m, w_s_, b_m, b_s_


def init_npn_params(feats, key):
    n = feats * 1                                     # n_window = 1
    k1, k2, k3 = jax.random.split(key, 3)
    p = {}
    p["w1_m"], p["w1_s_"], p["b1_m"], p["b1_s_"] = _init_linear(k1, n, feats)
    p["w2_m"], p["w2_s_"], p["b2_m"], p["b2_s_"] = _init_linear(k2, feats, feats)
    p["w3_m"], p["w3_s_"], p["b3_m"], p["b3_s_"] = _init_linear(k3, feats, feats)
    return p


# ---------------------------------------------------------------------------
# Pure-JAX reference (unfused, standard formulas) for correctness checking.
# ---------------------------------------------------------------------------
def npn_forward_ref(g, params):
    n = params["w1_m"].shape[0]
    x = g.reshape(1, n).astype(jnp.float32)

    def lin(x_m, x_s, w_m, w_s_, b_m, b_s_):
        w_s = jax.nn.softplus(w_s_)
        b_s = jax.nn.softplus(b_s_)
        o_m = jnp.dot(x_m, w_m, preferred_element_type=jnp.float32) + b_m
        o_s = (jnp.dot(x_s, w_s, preferred_element_type=jnp.float32)
               + jnp.dot(x_s, w_m * w_m, preferred_element_type=jnp.float32)
               + jnp.dot(x_m * x_m, w_s, preferred_element_type=jnp.float32)
               + b_s)
        return o_m, o_s

    o_m, o_s = lin(x, x * x, params["w1_m"], params["w1_s_"],
                   params["b1_m"], params["b1_s_"])
    a_m, a_s = _npn_relu(o_m, o_s)
    o_m, o_s = lin(a_m, a_s, params["w2_m"], params["w2_s_"],
                   params["b2_m"], params["b2_s_"])
    a_m, a_s = _npn_relu(o_m, o_s)
    o_m, o_s = lin(a_m, a_s, params["w3_m"], params["w3_s_"],
                   params["b3_m"], params["b3_s_"])
    a_m, a_s = _npn_sigmoid(o_m, o_s)
    return a_m.reshape(-1), a_s.reshape(-1)


if __name__ == "__main__":
    feats = 32
    key = jax.random.PRNGKey(0)
    k_params, k_input = jax.random.split(key)

    params = init_npn_params(feats, k_params)
    w_packed, b_packed = pack_npn_params(params)          # one-time transform
    g = jax.random.normal(k_input, (feats,), jnp.float32)  # n_window = 1

    mean, var = npn_forward(g, w_packed, b_packed)
    jax.block_until_ready((mean, var))

    ref_mean, ref_var = npn_forward_ref(g, params)
    assert mean.shape == (feats,) and var.shape == (feats,)
    assert bool(jnp.allclose(mean, ref_mean, atol=1e-4, rtol=1e-4))
    assert bool(jnp.allclose(var, ref_var, atol=1e-4, rtol=1e-4))

    print("KERNEL_OK")
</pallas_src>

<mosaic_0001>
module attributes {stable_mosaic.version = 11 : i64} {
  func.func @_npn_kernel(%arg0: memref<1x32xf32, #tpu.memory_space<vmem>>, %arg1: memref<3x128x64xf32, #tpu.memory_space<vmem>>, %arg2: memref<3x64xf32, #tpu.memory_space<vmem>>, %arg3: memref<2x32xf32, #tpu.memory_space<vmem>>) attributes {dimension_semantics = [], scalar_prefetch = 0 : i64, scratch_operands = 0 : i64, tpu.core_type = #tpu.core_type<tc>} {
    %c0 = arith.constant 0 : index
    %c0_0 = arith.constant 0 : index
    %0 = vector.load %arg0[%c0, %c0_0] : memref<1x32xf32, #tpu.memory_space<vmem>>, vector<1x32xf32>
    %1 = arith.mulf %0, %0 : vector<1x32xf32>
    %2 = arith.mulf %0, %0 : vector<1x32xf32>
    %3 = tpu.concatenate %0, %1, %1, %2 in 1 : vector<1x32xf32>, vector<1x32xf32>, vector<1x32xf32>, vector<1x32xf32> -> vector<1x128xf32>
    %c0_1 = arith.constant 0 : index
    %c0_2 = arith.constant 0 : index
    %c0_3 = arith.constant 0 : index
    %4 = vector.load %arg1[%c0_1, %c0_2, %c0_3] : memref<3x128x64xf32, #tpu.memory_space<vmem>>, vector<1x128x64xf32>
    %5 = vector.shape_cast %4 : vector<1x128x64xf32> to vector<128x64xf32>
    %cst = arith.constant dense<0.000000e+00> : vector<1x64xf32>
    %6 = tpu.matmul %3, %5, %cst {dimension_numbers = #tpu.dot_dimension_numbers<[1], [0], [0], [1], [0, 0, 1, 1], [], []>} : vector<1x128xf32>, vector<128x64xf32>, vector<1x64xf32> -> vector<1x64xf32>
    %c0_4 = arith.constant 0 : index
    %c0_5 = arith.constant 0 : index
    %7 = vector.load %arg2[%c0_4, %c0_5] : memref<3x64xf32, #tpu.memory_space<vmem>>, vector<1x64xf32>
    %8 = arith.addf %6, %7 : vector<1x64xf32>
    %9 = vector.extract_strided_slice %8 {offsets = [0, 0], sizes = [1, 32], strides = [1, 1]} : vector<1x64xf32> to vector<1x32xf32>
    %10 = vector.extract_strided_slice %8 {offsets = [0, 32], sizes = [1, 32], strides = [1, 1]} : vector<1x64xf32> to vector<1x32xf32>
    %cst_6 = arith.constant 9.99999996E-13 : f32
    %11 = vector.broadcast %cst_6 : f32 to vector<1x32xf32>
    %12 = arith.maximumf %10, %11 : vector<1x32xf32>
    %13 = math.rsqrt %12 : vector<1x32xf32>
    %14 = arith.mulf %12, %13 : vector<1x32xf32>
    %15 = arith.mulf %9, %13 : vector<1x32xf32>
    %cst_7 = arith.constant 1.59576917 : f32
    %16 = vector.broadcast %cst_7 : f32 to vector<1x32xf32>
    %17 = arith.mulf %16, %15 : vector<1x32xf32>
    %18 = arith.negf %17 : vector<1x32xf32>
    %19 = math.exp %18 : vector<1x32xf32>
    %cst_8 = arith.constant 1.000000e+00 : f32
    %20 = vector.broadcast %cst_8 : f32 to vector<1x32xf32>
    %21 = arith.addf %20, %19 : vector<1x32xf32>
    %22 = arith.divf %20, %21 : vector<1x32xf32>
    %cst_9 = arith.constant -5.000000e-01 : f32
    %23 = vector.broadcast %cst_9 : f32 to vector<1x32xf32>
    %24 = arith.mulf %23, %15 : vector<1x32xf32>
    %25 = arith.mulf %24, %15 : vector<1x32xf32>
    %26 = math.exp %25 : vector<1x32xf32>
    %cst_10 = arith.constant 0.398942292 : f32
    %27 = vector.broadcast %cst_10 : f32 to vector<1x32xf32>
    %28 = arith.mulf %26, %27 : vector<1x32xf32>
    %29 = arith.mulf %22, %9 : vector<1x32xf32>
    %30 = arith.mulf %14, %28 : vector<1x32xf32>
    %31 = arith.addf %29, %30 : vector<1x32xf32>
    %32 = arith.mulf %9, %9 : vector<1x32xf32>
    %33 = arith.addf %32, %12 : vector<1x32xf32>
    %34 = arith.mulf %22, %33 : vector<1x32xf32>
    %35 = arith.mulf %9, %14 : vector<1x32xf32>
    %36 = arith.mulf %35, %28 : vector<1x32xf32>
    %37 = arith.addf %34, %36 : vector<1x32xf32>
    %38 = arith.mulf %31, %31 : vector<1x32xf32>
    %39 = arith.subf %37, %38 : vector<1x32xf32>
    %cst_11 = arith.constant 0.000000e+00 : f32
    %40 = vector.broadcast %cst_11 : f32 to vector<1x32xf32>
    %41 = arith.maximumf %39, %40 : vector<1x32xf32>
    %42 = arith.mulf %31, %31 : vector<1x32xf32>
    %43 = tpu.concatenate %31, %41, %41, %42 in 1 : vector<1x32xf32>, vector<1x32xf32>, vector<1x32xf32>, vector<1x32xf32> -> vector<1x128xf32>
    %c1 = arith.constant 1 : index
    %c0_12 = arith.constant 0 : index
    %c0_13 = arith.constant 0 : index
    %44 = vector.load %arg1[%c1, %c0_12, %c0_13] : memref<3x128x64xf32, #tpu.memory_space<vmem>>, vector<1x128x64xf32>
    %45 = vector.shape_cast %44 : vector<1x128x64xf32> to vector<128x64xf32>
    %cst_14 = arith.constant dense<0.000000e+00> : vector<1x64xf32>
    %46 = tpu.matmul %43, %45, %cst_14 {dimension_numbers = #tpu.dot_dimension_numbers<[1], [0], [0], [1], [0, 0, 1, 1], [], []>} : vector<1x128xf32>, vector<128x64xf32>, vector<1x64xf32> -> vector<1x64xf32>
    %c1_15 = arith.constant 1 : index
    %c0_16 = arith.constant 0 : index
    %47 = vector.load %arg2[%c1_15, %c0_16] : memref<3x64xf32, #tpu.memory_space<vmem>>, vector<1x64xf32>
    %48 = arith.addf %46, %47 : vector<1x64xf32>
    %49 = vector.extract_strided_slice %48 {offsets = [0, 0], sizes = [1, 32], strides = [1, 1]} : vector<1x64xf32> to vector<1x32xf32>
    %50 = vector.extract_strided_slice %48 {offsets = [0, 32], sizes = [1, 32], strides = [1, 1]} : vector<1x64xf32> to vector<1x32xf32>
    %cst_17 = arith.constant 9.99999996E-13 : f32
    %51 = vector.broadcast %cst_17 : f32 to vector<1x32xf32>
    %52 = arith.maximumf %50, %51 : vector<1x32xf32>
    %53 = math.rsqrt %52 : vector<1x32xf32>
    %54 = arith.mulf %52, %53 : vector<1x32xf32>
    %55 = arith.mulf %49, %53 : vector<1x32xf32>
    %cst_18 = arith.constant 1.59576917 : f32
    %56 = vector.broadcast %cst_18 : f32 to vector<1x32xf32>
    %57 = arith.mulf %56, %55 : vector<1x32xf32>
    %58 = arith.negf %57 : vector<1x32xf32>
    %59 = math.exp %58 : vector<1x32xf32>
    %cst_19 = arith.constant 1.000000e+00 : f32
    %60 = vector.broadcast %cst_19 : f32 to vector<1x32xf32>
    %61 = arith.addf %60, %59 : vector<1x32xf32>
    %62 = arith.divf %60, %61 : vector<1x32xf32>
    %cst_20 = arith.constant -5.000000e-01 : f32
    %63 = vector.broadcast %cst_20 : f32 to vector<1x32xf32>
    %64 = arith.mulf %63, %55 : vector<1x32xf32>
    %65 = arith.mulf %64, %55 : vector<1x32xf32>
    %66 = math.exp %65 : vector<1x32xf32>
    %cst_21 = arith.constant 0.398942292 : f32
    %67 = vector.broadcast %cst_21 : f32 to vector<1x32xf32>
    %68 = arith.mulf %66, %67 : vector<1x32xf32>
    %69 = arith.mulf %62, %49 : vector<1x32xf32>
    %70 = arith.mulf %54, %68 : vector<1x32xf32>
    %71 = arith.addf %69, %70 : vector<1x32xf32>
    %72 = arith.mulf %49, %49 : vector<1x32xf32>
    %73 = arith.addf %72, %52 : vector<1x32xf32>
    %74 = arith.mulf %62, %73 : vector<1x32xf32>
    %75 = arith.mulf %49, %54 : vector<1x32xf32>
    %76 = arith.mulf %75, %68 : vector<1x32xf32>
    %77 = arith.addf %74, %76 : vector<1x32xf32>
    %78 = arith.mulf %71, %71 : vector<1x32xf32>
    %79 = arith.subf %77, %78 : vector<1x32xf32>
    %cst_22 = arith.constant 0.000000e+00 : f32
    %80 = vector.broadcast %cst_22 : f32 to vector<1x32xf32>
    %81 = arith.maximumf %79, %80 : vector<1x32xf32>
    %82 = arith.mulf %71, %71 : vector<1x32xf32>
    %83 = tpu.concatenate %71, %81, %81, %82 in 1 : vector<1x32xf32>, vector<1x32xf32>, vector<1x32xf32>, vector<1x32xf32> -> vector<1x128xf32>
    %c2 = arith.constant 2 : index
    %c0_23 = arith.constant 0 : index
    %c0_24 = arith.constant 0 : index
    %84 = vector.load %arg1[%c2, %c0_23, %c0_24] : memref<3x128x64xf32, #tpu.memory_space<vmem>>, vector<1x128x64xf32>
    %85 = vector.shape_cast %84 : vector<1x128x64xf32> to vector<128x64xf32>
    %cst_25 = arith.constant dense<0.000000e+00> : vector<1x64xf32>
    %86 = tpu.matmul %83, %85, %cst_25 {dimension_numbers = #tpu.dot_dimension_numbers<[1], [0], [0], [1], [0, 0, 1, 1], [], []>} : vector<1x128xf32>, vector<128x64xf32>, vector<1x64xf32> -> vector<1x64xf32>
    %c2_26 = arith.constant 2 : index
    %c0_27 = arith.constant 0 : index
    %87 = vector.load %arg2[%c2_26, %c0_27] : memref<3x64xf32, #tpu.memory_space<vmem>>, vector<1x64xf32>
    %88 = arith.addf %86, %87 : vector<1x64xf32>
    %89 = vector.extract_strided_slice %88 {offsets = [0, 0], sizes = [1, 32], strides = [1, 1]} : vector<1x64xf32> to vector<1x32xf32>
    %90 = vector.extract_strided_slice %88 {offsets = [0, 32], sizes = [1, 32], strides = [1, 1]} : vector<1x64xf32> to vector<1x32xf32>
    %cst_28 = arith.constant 0.000000e+00 : f32
    %91 = vector.broadcast %cst_28 : f32 to vector<1x32xf32>
    %92 = arith.maximumf %90, %91 : vector<1x32xf32>
    %cst_29 = arith.constant 0.392699093 : f32
    %93 = vector.broadcast %cst_29 : f32 to vector<1x32xf32>
    %94 = arith.mulf %93, %92 : vector<1x32xf32>
    %cst_30 = arith.constant 1.000000e+00 : f32
    %95 = vector.broadcast %cst_30 : f32 to vector<1x32xf32>
    %96 = arith.addf %95, %94 : vector<1x32xf32>
    %97 = math.rsqrt %96 : vector<1x32xf32>
    %98 = arith.mulf %89, %97 : vector<1x32xf32>
    %99 = arith.negf %98 : vector<1x32xf32>
    %100 = math.exp %99 : vector<1x32xf32>
    %cst_31 = arith.constant 1.000000e+00 : f32
    %101 = vector.broadcast %cst_31 : f32 to vector<1x32xf32>
    %102 = arith.addf %101, %100 : vector<1x32xf32>
    %103 = arith.divf %101, %102 : vector<1x32xf32>
    %cst_32 = arith.constant -0.881373584 : f32
    %104 = vector.broadcast %cst_32 : f32 to vector<1x32xf32>
    %105 = arith.addf %89, %104 : vector<1x32xf32>
    %cst_33 = arith.constant 1.17157292 : f32
    %106 = vector.broadcast %cst_33 : f32 to vector<1x32xf32>
    %107 = arith.mulf %106, %105 : vector<1x32xf32>
    %cst_34 = arith.constant 0.539012074 : f32
    %108 = vector.broadcast %cst_34 : f32 to vector<1x32xf32>
    %109 = arith.mulf %108, %92 : vector<1x32xf32>
    %cst_35 = arith.constant 1.000000e+00 : f32
    %110 = vector.broadcast %cst_35 : f32 to vector<1x32xf32>
    %111 = arith.addf %110, %109 : vector<1x32xf32>
    %112 = math.rsqrt %111 : vector<1x32xf32>
    %113 = arith.mulf %107, %112 : vector<1x32xf32>
    %114 = arith.negf %113 : vector<1x32xf32>
    %115 = math.exp %114 : vector<1x32xf32>
    %cst_36 = arith.constant 1.000000e+00 : f32
    %116 = vector.broadcast %cst_36 : f32 to vector<1x32xf32>
    %117 = arith.addf %116, %115 : vector<1x32xf32>
    %118 = arith.divf %116, %117 : vector<1x32xf32>
    %119 = arith.mulf %103, %103 : vector<1x32xf32>
    %120 = arith.subf %118, %119 : vector<1x32xf32>
    %cst_37 = arith.constant 0.000000e+00 : f32
    %121 = vector.broadcast %cst_37 : f32 to vector<1x32xf32>
    %122 = arith.maximumf %120, %121 : vector<1x32xf32>
    %123 = tpu.concatenate %103, %122 in 0 : vector<1x32xf32>, vector<1x32xf32> -> vector<2x32xf32>
    %c0_38 = arith.constant 0 : index
    %c0_39 = arith.constant 0 : index
    %124 = vector.load %arg3[%c0_38, %c0_39] : memref<2x32xf32, #tpu.memory_space<vmem>>, vector<2x32xf32>
    tpu.vector_store %arg3[%c0_38, %c0_39], %123 {strides = array<i32>} : memref<2x32xf32, #tpu.memory_space<vmem>>, vector<2x32xf32>,
    return
  }
}

</mosaic_0001>

<bundles_post_ra>
// kernel: tpu_custom_call.1
= control target key start
LH: loop header
LB: loop body
LE: loop exit
PB: predicated region body
PF: predicated region fallthrough
CT: control target
= control target key end

     0   :  { %v18_v1 = vlaneseq  ;;  %v727_v3 = vmov 0.0   ;;  %vm728_vm0 = vmmov 0   ;;  %s1017_s0 = inlined_call_operand.vmem [shape: f32[1,32], index: 0, kind: input, shape index: {}]   ;;  %s1018_s1 = inlined_call_operand.vmem [shape: f32[3,128,64], index: 1, kind: input, shape index: {}]   ;;  %s1019_s2 = inlined_call_operand.vmem [shape: f32[3,64], index: 2, kind: input, shape index: {}]   ;;  %s1020_s3 = inlined_call_operand.hbm [shape: f32[2,32], index: 3, kind: output, shape index: {}]  }
   0x1   :  { %v756_v0 = vld [vmem:[%s1017_s0] sm:$0x1]  ;;  %v52_v2 = vld [vmem:[%s1018_s1 + $0x78] sm:$0xff]  ;;  %566 = vmatprep.subr.mxu0 %v727_v3  ;;  %v51_v4 = vld [vmem:[%s1018_s1 + $0x70] sm:$0xff]  ;;  %601 = vmatprep.subr.mxu1 %v727_v3 }
   0x2   :  { %v16_v5 = vmul.f32 %v756_v0, %v756_v0  ;;  %v19_v6 = vshrl.u32 %v18_v1, 7  ;;  %567 = vmatpush3.msra.mxu0 %v52_v2  ;;  %v50_v7 = vld [vmem:[%s1018_s1 + $0x68] sm:$0xff]  ;;  %598 = vmatprep.mubr.msk.f32.mxu0 %vm728_vm0, %v727_v3  ;;  %v49_v10 = vld [vmem:[%s1018_s1 + $0x60] sm:$0xff] }
   0x3   :  { %568 = vmatprep.subr.mxu0 %v727_v3  ;;  %633 = vmatprep.mubr.msk.f32.mxu1 %vm728_vm0, %v727_v3 }
   0x4   :  { %v20_v8 = vsub.s32 0, %v19_v6  ;;  %569 = vmatpush3.msra.mxu0 %v51_v4 }
   0x5   :  { %570 = vmatprep.subr.mxu0 %v727_v3 }
   0x6   :  { %v21_v9 = vrot.slane %v16_v5, %v20_v8  ;;  %571 = vmatpush3.msra.mxu0 %v50_v7 }
   0x7   :  { %8 = vsyncpa [#allocation3], 0  ;;  %572 = vmatprep.subr.mxu0 %v727_v3  ;;  %s729_s21 = smov 32   ;;  %s730_s22 = smov 96   ;;  %v48_v11 = vld [vmem:[%s1018_s1 + $0x58] sm:$0xff]  ;;  %v47_v12 = vld [vmem:[%s1018_s1 + $0x50] sm:$0xff] }
   0x8   :  { %22 = vrot.lane.b32.xlu0 %v21_v9, %s729_s21  ;;  %28 = vrot.lane.b32.xlu1 %v21_v9, %s730_s22  ;;  %s731_s27 = smov 64   ;;  %v46_v13 = vld [vmem:[%s1018_s1 + $0x48] sm:$0xff]  ;;  %v45_v14 = vld [vmem:[%s1018_s1 + $0x40] sm:$0xff]  ;;  %vm31_vm1 = vcmask 261120   ;;  %vm33_vm2 = vcmask 523264   ;;  %vm35_vm3 = vcmask 785408  }
   0x9   :  { %573 = vmatpush3.msra.mxu0 %v49_v10  ;;  %v44_v15 = vld [vmem:[%s1018_s1 + $0x38] sm:$0xff]  ;;  %v43_v16 = vld [vmem:[%s1018_s1 + $0x30] sm:$0xff]  ;;  %v42_v17 = vld [vmem:[%s1018_s1 + $0x28] sm:$0xff]  ;;  %vm461_vm4 = vcmask 1040384   ;;  %vm463_vm5 = vcmask 254976  }
   0xa   :  { %574 = vmatprep.subr.mxu0 %v727_v3  ;;  %v41_v18 = vld [vmem:[%s1018_s1 + $0x20] sm:$0xff]  ;;  %v40_v19 = vld [vmem:[%s1018_s1 + $0x18] sm:$0xff]  ;;  %v39_v20 = vld [vmem:[%s1018_s1 + $0x10] sm:$0xff] }
   0xb   :  { %575 = vmatpush3.msra.mxu0 %v48_v11  ;;  %v38_v21 = vld [vmem:[%s1018_s1 + $0x8] sm:$0xff]  ;;  %v37_v22 = vld [vmem:[%s1018_s1] sm:$0xff]  ;;  %v495_v45 = vld [vmem:[%s1018_s1 + $0xf8] sm:$0xff] }
   0xc   :  { %25 = vrot.lane.b32.xlu0 %v21_v9, %s731_s27  ;;  %576 = vmatprep.subr.mxu0 %v727_v3  ;;  %v53_v29 = vld [vmem:[%s1019_s2] sm:$0x1]  ;;  %v494_v46 = vld [vmem:[%s1018_s1 + $0xf0] sm:$0xff]  ;;  %v493_v47 = vld [vmem:[%s1018_s1 + $0xe8] sm:$0xff] }
   0xd   :  { %577 = vmatpush3.msra.mxu0 %v47_v12  ;;  %602 = vmatpush3.msra.mxu1 %v495_v45  ;;  %v492_v48 = vld [vmem:[%s1018_s1 + $0xe0] sm:$0xff]  ;;  %v491_v49 = vld [vmem:[%s1018_s1 + $0xd8] sm:$0xff]  ;;  %v490_v50 = vld [vmem:[%s1018_s1 + $0xd0] sm:$0xff] }
   0xe   :  { %578 = vmatprep.subr.mxu0 %v727_v3  ;;  %603 = vmatprep.subr.mxu1 %v727_v3  ;;  %v489_v51 = vld [vmem:[%s1018_s1 + $0xc8] sm:$0xff]  ;;  %v488_v52 = vld [vmem:[%s1018_s1 + $0xc0] sm:$0xff]  ;;  %v487_v53 = vld [vmem:[%s1018_s1 + $0xb8] sm:$0xff] }
   0xf   :  { %579 = vmatpush3.msra.mxu0 %v46_v13  ;;  %604 = vmatpush3.msra.mxu1 %v494_v46  ;;  %v486_v54 = vld [vmem:[%s1018_s1 + $0xb0] sm:$0xff]  ;;  %v485_v55 = vld [vmem:[%s1018_s1 + $0xa8] sm:$0xff]  ;;  %v484_v56 = vld [vmem:[%s1018_s1 + $0xa0] sm:$0xff] }
  0x10   :  { %580 = vmatprep.subr.mxu0 %v727_v3  ;;  %605 = vmatprep.subr.mxu1 %v727_v3  ;;  %v483_v57 = vld [vmem:[%s1018_s1 + $0x98] sm:$0xff]  ;;  %v481_v4 = vld [vmem:[%s1018_s1 + $0x88] sm:$0xff]  ;;  %v480_v9 = vld [vmem:[%s1018_s1 + $0x80] sm:$0xff] }
  0x11   :  { %581 = vmatpush3.msra.mxu0 %v45_v14  ;;  %606 = vmatpush3.msra.mxu1 %v493_v47  ;;  %v506_v45 = vld [vmem:[%s1018_s1 + $0x148] sm:$0xff]  ;;  %v505_v46 = vld [vmem:[%s1018_s1 + $0x140] sm:$0xff]  ;;  %v504_v47 = vld [vmem:[%s1018_s1 + $0x138] sm:$0xff] }
  0x12   :  { %582 = vmatprep.subr.mxu0 %v727_v3  ;;  %607 = vmatprep.subr.mxu1 %v727_v3 }
  0x13   :  { %583 = vmatpush3.msra.mxu0 %v44_v15  ;;  %608 = vmatpush3.msra.mxu1 %v492_v48  ;;  %v503_v48 = vld [vmem:[%s1018_s1 + $0x130] sm:$0xff] }
  0x14   :  { %584 = vmatprep.subr.mxu0 %v727_v3  ;;  %609 = vmatprep.subr.mxu1 %v727_v3 }
  0x15   :  { %585 = vmatpush3.msra.mxu0 %v43_v16  ;;  %610 = vmatpush3.msra.mxu1 %v491_v49  ;;  %v502_v49 = vld [vmem:[%s1018_s1 + $0x128] sm:$0xff] }
  0x16   :  { %586 = vmatprep.subr.mxu0 %v727_v3  ;;  %611 = vmatprep.subr.mxu1 %v727_v3 }
  0x17   :  { %587 = vmatpush3.msra.mxu0 %v42_v17  ;;  %612 = vmatpush3.msra.mxu1 %v490_v50  ;;  %v501_v50 = vld [vmem:[%s1018_s1 + $0x120] sm:$0xff] }
  0x18   :  { %588 = vmatprep.subr.mxu0 %v727_v3  ;;  %613 = vmatprep.subr.mxu1 %v727_v3 }
  0x19   :  { %589 = vmatpush3.msra.mxu0 %v41_v18  ;;  %614 = vmatpush3.msra.mxu1 %v489_v51  ;;  %v500_v51 = vld [vmem:[%s1018_s1 + $0x118] sm:$0xff] }
  0x1a   :  { %590 = vmatprep.subr.mxu0 %v727_v3  ;;  %615 = vmatprep.subr.mxu1 %v727_v3 }
  0x1b   :  { %591 = vmatpush3.msra.mxu0 %v40_v19  ;;  %616 = vmatpush3.msra.mxu1 %v488_v52 }
  0x1c   :  { %592 = vmatprep.subr.mxu0 %v727_v3  ;;  %617 = vmatprep.subr.mxu1 %v727_v3 }
  0x1d   :  { %593 = vmatpush3.msra.mxu0 %v39_v20  ;;  %618 = vmatpush3.msra.mxu1 %v487_v53 }
  0x1e   :  { %594 = vmatprep.subr.mxu0 %v727_v3  ;;  %619 = vmatprep.subr.mxu1 %v727_v3 }
  0x1f   :  { %595 = vmatpush3.msra.mxu0 %v38_v21  ;;  %620 = vmatpush3.msra.mxu1 %v486_v54 }
  0x20   :  { %596 = vmatprep.subr.mxu0 %v727_v3  ;;  %621 = vmatprep.subr.mxu1 %v727_v3 }
  0x21   :  { %597 = vmatpush3.msra.mxu0 %v37_v22  ;;  %622 = vmatpush3.msra.mxu1 %v485_v55 }
  0x22   :  { %636 = vmatprep.subr.mxu0 %v727_v3  ;;  %623 = vmatprep.subr.mxu1 %v727_v3 }
  0x23   :  { %624 = vmatpush3.msra.mxu1 %v484_v56 }
  0x24   :  { %625 = vmatprep.subr.mxu1 %v727_v3 }
  0x25   :  { %626 = vmatpush3.msra.mxu1 %v483_v57 }
  0x26   :  { %627 = vmatprep.subr.mxu1 %v727_v3 }
  0x7a   :  { %v23_v23 = vpop.permute.xlu0 %22  ;;  %v29_v24 = vpop.permute.xlu1 %28 }
  0x7b   :  { %v32_v25 = vsel %vm31_vm1, %v756_v0, %v23_v23  ;;  %v482_v0 = vld [vmem:[%s1018_s1 + $0x90] sm:$0xff]  ;;  %v203_v23 = vld [vmem:[%s1019_s2 + $0x1] sm:$0x1] }
  0x7c   :  { %628 = vmatpush3.msra.mxu1 %v482_v0 }
  0x7d   :  { %629 = vmatprep.subr.mxu1 %v727_v3 }
  0x7e   :  { %v26_v26 = vpop.permute.xlu0 %25  ;;  %630 = vmatpush3.msra.mxu1 %v481_v4 }
  0x7f   :  { %v34_v27 = vsel %vm33_vm2, %v32_v25, %v26_v26  ;;  %631 = vmatprep.subr.mxu1 %v727_v3 }
  0x80   :  { %v36_v28 = vsel %vm35_vm3, %v34_v27, %v29_v24  ;;  %632 = vmatpush3.msra.mxu1 %v480_v9 }
  0x81   :  { %599 = vmatmul.mubr.f32.vlgmr.msra.gmra.mxu0 %v36_v28 }
  0x82   :  { %668 = vmatprep.mubr.msk.f32.mxu0 %vm728_vm0, %v727_v3 }
 0x141   :  { %v120_v30 = vpop.f32.mrf.mxu0 }
 0x142   :  { %v842_v31 = vadd.f32 %v120_v30, %v53_v29 }
 0x143   :  { %v600_v32 = vpop.f32.mrf.mxu0 }
 0x144   :  { %v124_v33 = vmax.f32 %v842_v31, 1e-12  ;;  %v155_v5 = vmul.f32 %v842_v31, %v842_v31 }
 0x146   :  { %677 = vrsqrt.f32 %v124_v33 }
 0x153   :  { %v678_v34 = vpop.eup %677 }
 0x154   :  { %128 = vrot.lane.b32.xlu1 %v678_v34, %s730_s22  ;;  %v126_v35 = vmul.f32 %v678_v34, %v124_v33 }
 0x158   :  { %157 = vrot.lane.b32.xlu1 %v124_v33, %s730_s22 }
 0x1c6   :  { %v129_v36 = vpop.permute.xlu1 %128 }
 0x1c7   :  { %v131_v37 = vmul.f32 %v129_v36, %v842_v31 }
 0x1c9   :  { %v139_v38 = vmul.f32 -0.5, %v131_v37  ;;  %v479_v58 = vmul.f32 -1.5957692, %v131_v37 }
 0x1ca   :  { %v158_v2 = vpop.permute.xlu1 %157 }
 0x1cb   :  { %v140_v39 = vmul.f32 %v139_v38, %v131_v37  ;;  %v134_v59 = vmul.f32 1.442695, %v479_v58  ;;  %v160_v6 = vadd.f32 %v158_v2, %v155_v5  ;;  %v499_v58 = vld [vmem:[%s1018_s1 + $0x110] sm:$0xff]  ;;  %v497_v2 = vld [vmem:[%s1018_s1 + $0x100] sm:$0xff] }
 0x1cd   :  { %v141_v40 = vmul.f32 1.442695, %v140_v39  ;;  %v512_v39 = vld [vmem:[%s1018_s1 + $0x178] sm:$0xff] }
 0x1ce   :  { %637 = vmatpush3.msra.mxu0 %v512_v39 }
 0x1cf   :  { %679 = vpow2.f32 %v141_v40  ;;  %v511_v40 = vld [vmem:[%s1018_s1 + $0x170] sm:$0xff]  ;;  %638 = vmatprep.subr.mxu0 %v727_v3 }
 0x1d0   :  { %681 = vpow2.f32 %v134_v59  ;;  %639 = vmatpush3.msra.mxu0 %v511_v40 }
 0x1d1   :  { %640 = vmatprep.subr.mxu0 %v727_v3 }
 0x1dc   :  { %v680_v41 = vpop.eup %679 }
 0x1dd   :  { %v143_v42 = vmul.f32 0.3989423, %v680_v41  ;;  %v682_v60 = vpop.eup %681  ;;  %v510_v41 = vld [vmem:[%s1018_s1 + $0x168] sm:$0xff] }
 0x1de   :  { %v136_v61 = vadd.f32 1.0, %v682_v60  ;;  %641 = vmatpush3.msra.mxu0 %v510_v41 }
 0x1df   :  { %146 = vrot.lane.b32.xlu0 %v143_v42, %s729_s21  ;;  %642 = vmatprep.subr.mxu0 %v727_v3 }
 0x1e0   :  { %683 = vrcp.f32 %v136_v61  ;;  %v498_v61 = vld [vmem:[%s1018_s1 + $0x108] sm:$0xff] }
 0x1e3   :  { %163 = vrot.lane.b32.xlu0 %v126_v35, %s730_s22 }
 0x1ed   :  { %v684_v1 = vpop.eup %683 }
 0x1ee   :  { %v144_v8 = vmul.f32 %v684_v1, %v842_v31  ;;  %v161_v11 = vmul.f32 %v684_v1, %v160_v6 }
 0x251   :  { %v147_v43 = vpop.permute.xlu0 %146 }
 0x252   :  { %v149_v44 = vmul.f32 %v147_v43, %v126_v35  ;;  %v508_v43 = vld [vmem:[%s1018_s1 + $0x158] sm:$0xff] }
 0x254   :  { %151 = vrot.lane.b32.xlu1 %v149_v44, %s730_s22  ;;  %v507_v44 = vld [vmem:[%s1018_s1 + $0x150] sm:$0xff] }
 0x255   :  { %v164_v62 = vpop.permute.xlu0 %163 }
 0x256   :  { %v166_v63 = vmul.f32 %v164_v62, %v842_v31 }
 0x258   :  { %v167_v7 = vmul.f32 %v166_v63, %v143_v42  ;;  %v509_v42 = vld [vmem:[%s1018_s1 + $0x160] sm:$0xff] }
 0x259   :  { %643 = vmatpush3.msra.mxu0 %v509_v42 }
 0x25a   :  { %v168_v13 = vadd.f32 %v167_v7, %v161_v11  ;;  %644 = vmatprep.subr.mxu0 %v727_v3 }
 0x25b   :  { %645 = vmatpush3.msra.mxu0 %v508_v43 }
 0x25c   :  { %646 = vmatprep.subr.mxu0 %v727_v3 }
 0x25d   :  { %647 = vmatpush3.msra.mxu0 %v507_v44 }
 0x25e   :  { %648 = vmatprep.subr.mxu0 %v727_v3 }
 0x25f   :  { %649 = vmatpush3.msra.mxu0 %v506_v45 }
 0x260   :  { %650 = vmatprep.subr.mxu0 %v727_v3 }
 0x261   :  { %651 = vmatpush3.msra.mxu0 %v505_v46 }
 0x262   :  { %652 = vmatprep.subr.mxu0 %v727_v3 }
 0x263   :  { %653 = vmatpush3.msra.mxu0 %v504_v47 }
 0x264   :  { %654 = vmatprep.subr.mxu0 %v727_v3 }
 0x265   :  { %655 = vmatpush3.msra.mxu0 %v503_v48 }
 0x266   :  { %656 = vmatprep.subr.mxu0 %v727_v3 }
 0x267   :  { %657 = vmatpush3.msra.mxu0 %v502_v49 }
 0x268   :  { %658 = vmatprep.subr.mxu0 %v727_v3 }
 0x269   :  { %659 = vmatpush3.msra.mxu0 %v501_v50 }
 0x26a   :  { %660 = vmatprep.subr.mxu0 %v727_v3 }
 0x26b   :  { %661 = vmatpush3.msra.mxu0 %v500_v51 }
 0x26c   :  { %662 = vmatprep.subr.mxu0 %v727_v3 }
 0x26d   :  { %663 = vmatpush3.msra.mxu0 %v499_v58 }
 0x26e   :  { %664 = vmatprep.subr.mxu0 %v727_v3 }
 0x26f   :  { %665 = vmatpush3.msra.mxu0 %v498_v61 }
 0x270   :  { %666 = vmatprep.subr.mxu0 %v727_v3 }
 0x271   :  { %667 = vmatpush3.msra.mxu0 %v497_v2 }
 0x2c6   :  { %v152_v10 = vpop.permute.xlu1 %151 }
 0x2c7   :  { %v154_v12 = vadd.f32 %v152_v10, %v144_v8 }
 0x2c9   :  { %v169_v14 = vmul.f32 %v154_v12, %v154_v12 }
 0x2cb   :  { %v170_v15 = vsub.f32 %v168_v13, %v169_v14 }
 0x2cd   :  { %v171_v16 = vmax.f32 %v170_v15, 0.0 }
 0x2cf   :  { %176 = vrot.lane.b32.xlu1 %v171_v16, %s731_s27  ;;  %173 = vrot.lane.b32.xlu0 %v171_v16, %s729_s21  ;;  %v353_v16 = vld [vmem:[%s1019_s2 + $0x2] sm:$0x1]  ;;  %s732_s2 = smov [#allocation2]  }
 0x2d3   :  { %180 = vrot.lane.b32.xlu0 %v169_v14, %s730_s22 }
 0x341   :  { %v174_v17 = vpop.permute.xlu0 %173  ;;  %v177_v18 = vpop.permute.xlu1 %176 }
 0x342   :  { %v183_v19 = vsel %vm31_vm1, %v154_v12, %v174_v17 }
 0x343   :  { %v184_v21 = vsel %vm33_vm2, %v183_v19, %v177_v18 }
 0x345   :  { %v181_v20 = vpop.permute.xlu0 %180 }
 0x346   :  { %v185_v22 = vsel %vm35_vm3, %v184_v21, %v181_v20 }
 0x347   :  { %634 = vmatmul.mubr.f32.vlgmr.msra.gmra.mxu1 %v185_v22 }
 0x407   :  { %v270_v24 = vpop.f32.mrf.mxu1 }
 0x408   :  { %v927_v25 = vadd.f32 %v270_v24, %v203_v23 }
 0x409   :  { %v635_v26 = vpop.f32.mrf.mxu1 }
 0x40a   :  { %v274_v27 = vmax.f32 %v927_v25, 1e-12  ;;  %v305_v62 = vmul.f32 %v927_v25, %v927_v25 }
 0x40c   :  { %685 = vrsqrt.f32 %v274_v27 }
 0x419   :  { %v686_v28 = vpop.eup %685 }
 0x41a   :  { %278 = vrot.lane.b32.xlu1 %v686_v28, %s730_s22  ;;  %v276_v29 = vmul.f32 %v686_v28, %v274_v27 }
 0x41e   :  { %307 = vrot.lane.b32.xlu1 %v274_v27, %s730_s22 }
 0x48c   :  { %v279_v30 = vpop.permute.xlu1 %278 }
 0x48d   :  { %v281_v31 = vmul.f32 %v279_v30, %v927_v25 }
 0x48f   :  { %v289_v32 = vmul.f32 -0.5, %v281_v31  ;;  %v496_v52 = vmul.f32 -1.5957692, %v281_v31 }
 0x490   :  { %v308_v60 = vpop.permute.xlu1 %307 }
 0x491   :  { %v290_v33 = vmul.f32 %v289_v32, %v281_v31  ;;  %v284_v53 = vmul.f32 1.442695, %v496_v52  ;;  %v310_v63 = vadd.f32 %v308_v60, %v305_v62 }
 0x493   :  { %v291_v34 = vmul.f32 1.442695, %v290_v33 }
 0x495   :  { %687 = vpow2.f32 %v291_v34 }
 0x496   :  { %689 = vpow2.f32 %v284_v53 }
 0x4a2   :  { %v688_v35 = vpop.eup %687 }
 0x4a3   :  { %v293_v36 = vmul.f32 0.3989423, %v688_v35  ;;  %v690_v54 = vpop.eup %689 }
 0x4a4   :  { %v286_v55 = vadd.f32 1.0, %v690_v54 }
 0x4a5   :  { %296 = vrot.lane.b32.xlu0 %v293_v36, %s729_s21 }
 0x4a6   :  { %691 = vrcp.f32 %v286_v55 }
 0x4a9   :  { %313 = vrot.lane.b32.xlu0 %v276_v29, %s730_s22 }
 0x4b3   :  { %v692_v59 = vpop.eup %691 }
 0x4b4   :  { %v294_v1 = vmul.f32 %v692_v59, %v927_v25  ;;  %v311_v5 = vmul.f32 %v692_v59, %v310_v63 }
 0x517   :  { %v297_v37 = vpop.permute.xlu0 %296 }
 0x518   :  { %v299_v38 = vmul.f32 %v297_v37, %v276_v29 }
 0x51a   :  { %301 = vrot.lane.b32.xlu1 %v299_v38, %s730_s22 }
 0x51b   :  { %v314_v56 = vpop.permute.xlu0 %313 }
 0x51c   :  { %v316_v57 = vmul.f32 %v314_v56, %v927_v25 }
 0x51e   :  { %v317_v0 = vmul.f32 %v316_v57, %v293_v36 }
 0x520   :  { %v318_v7 = vadd.f32 %v317_v0, %v311_v5 }
 0x58c   :  { %v302_v4 = vpop.permute.xlu1 %301 }
 0x58d   :  { %v304_v6 = vadd.f32 %v302_v4, %v294_v1 }
 0x58f   :  { %v319_v8 = vmul.f32 %v304_v6, %v304_v6 }
 0x591   :  { %v320_v9 = vsub.f32 %v318_v7, %v319_v8 }
 0x593   :  { %v321_v10 = vmax.f32 %v320_v9, 0.0 }
 0x595   :  { %326 = vrot.lane.b32.xlu1 %v321_v10, %s731_s27  ;;  %323 = vrot.lane.b32.xlu0 %v321_v10, %s729_s21  ;;  %s471_s21 = sshll.u32 %s732_s2, 4  ;;  %s472_s21 = int_to_ptr.vmem [resolvable:$true] %s471_s21 }
 0x596   :  { %p710_p1 = scmp.lt.s32.totalorder %s472_s21, %s472_s21 }
 0x599   :  { %330 = vrot.lane.b32.xlu0 %v319_v8, %s730_s22 }
 0x607   :  { %v324_v11 = vpop.permute.xlu0 %323  ;;  %v327_v3 = vpop.permute.xlu1 %326 }
 0x608   :  { %v333_v12 = vsel %vm31_vm1, %v304_v6, %v324_v11 }
 0x609   :  { %v334_v13 = vsel %vm33_vm2, %v333_v12, %v327_v3 }
 0x60b   :  { %v331_v14 = vpop.permute.xlu0 %330 }
 0x60c   :  { %v335_v15 = vsel %vm35_vm3, %v334_v13, %v331_v14 }
 0x60d   :  { %669 = vmatmul.mubr.f32.vlgmr.msra.gmra.mxu0 %v335_v15 }
 0x6cd   :  { %v420_v17 = vpop.f32.mrf.mxu0 }
 0x6ce   :  { %v421_v18 = vadd.f32 %v420_v17, %v353_v16 }
 0x6cf   :  { %v670_v19 = vpop.f32.mrf.mxu0 }
 0x6d0   :  { %v424_v20 = vmax.f32 %v421_v18, 0.0  ;;  %v439_v27 = vadd.f32 -0.8813736, %v421_v18 }
 0x6d2   :  { %v425_v21 = vmul.f32 0.3926991, %v424_v20  ;;  %v441_v22 = vmul.f32 0.5390121, %v424_v20  ;;  %v440_v28 = vmul.f32 1.1715729, %v439_v27 }
 0x6d4   :  { %v426_v23 = vadd.f32 1.0, %v425_v21  ;;  %v442_v24 = vadd.f32 1.0, %v441_v22 }
 0x6d6   :  { %693 = vrsqrt.f32 %v426_v23 }
 0x6d7   :  { %695 = vrsqrt.f32 %v442_v24 }
 0x6e3   :  { %v694_v25 = vpop.eup %693 }
 0x6e4   :  { %v696_v26 = vpop.eup %695  ;;  %429 = vrot.lane.b32.xlu1 %v694_v25, %s730_s22 }
 0x6e5   :  { %445 = vrot.lane.b32.xlu0 %v696_v26, %s730_s22  ;;  %s705_s22 = scalar_lea.vmem %s472_s21, 32 }
 0x6e6   :  { %p706_p0 = scmp.ne.s32.totalorder %s472_s21, %s705_s22  ;;  %p711_p2 = scmp.lt.s32.totalorder %s705_s22, %s705_s22 }
 0x6e8   :  { %p712_p3 = por %p711_p2, %p710_p1 }
 0x6ea   :  { %p713_p4 = pnand %p712_p3, %p706_p0 }
 0x756   :  { %v430_v29 = vpop.permute.xlu1 %429 }
 0x757   :  { %v446_v30 = vpop.permute.xlu0 %445  ;;  %v432_v31 = vmul.f32 %v430_v29, %v421_v18 }
 0x758   :  { %v448_v32 = vmul.f32 %v446_v30, %v440_v28 }
 0x759   :  { %v513_v33 = vmul.f32 -1.442695, %v432_v31 }
 0x75a   :  { %v514_v34 = vmul.f32 -1.442695, %v448_v32 }
 0x75b   :  { %697 = vpow2.f32 %v513_v33 }
 0x75c   :  { %699 = vpow2.f32 %v514_v34 }
 0x768   :  { %v698_v35 = vpop.eup %697 }
 0x769   :  { %v700_v36 = vpop.eup %699  ;;  %v436_v37 = vadd.f32 1.0, %v698_v35 }
 0x76a   :  { %v452_v38 = vadd.f32 1.0, %v700_v36 }
 0x76b   :  { %701 = vrcp.f32 %v436_v37 }
 0x76c   :  { %703 = vrcp.f32 %v452_v38 }
 0x778   :  { %v702_v39 = vpop.eup %701 }
 0x779   :  { %v455_v40 = vmul.f32 %v702_v39, %v702_v39  ;;  %v704_v41 = vpop.eup %703 }
 0x77b   :  { %v456_v42 = vsub.f32 %v704_v41, %v455_v40 }
 0x77d   :  { %v457_v43 = vmax.f32 %v456_v42, 0.0 }
 0x77f   :  { %v459_v44 = vrot.slane %v457_v43, 7 }
 0x781   :  { %v462_v45 = vsel %vm461_vm4, %v702_v39, %v459_v44 }
 0x782   :  { %464 = vst.msk [vmem:[#allocation2] sm:$0x3] %vm463_vm5, %v462_v45 }
 0x783   :  { %716 = shalt.err (!%p713_p4)
}
 0x784   :  { %474 = dma.vmem_to_hbm [thread:$0]  %s472_s21, 32, %s1020_s3, [#allocation3]  }
 0x785   :  { %725 = dma.done.wait [#allocation3], 32  }
 0x786   :  { %726 = vsyncadd [#allocation3], 4294967264 }
 0x787   :  { %478 = vsyncpa [#allocation3], 1 }

</bundles_post_ra>
